<compile_context>
chip_gen: v6e
topology: v6e:2x2x1
jax: 0.10.0
libtpu: 0.0.40
codegen_flags: <defaults>
</compile_context>

<pallas_src>
import jax
import jax.numpy as jnp
from jax import lax
from jax.experimental import pallas as pl
from jax.experimental.pallas import tpu as pltpu

EPS = 1e-5


def _round_up(x, m):
    return ((x + m - 1) // m) * m


def _bn_pair(a, half):
    """Per-branch BatchNorm (training mode, no affine) on a (2*half, C) f32 block.

    Rows [0, half) are branch 1, rows [half, 2*half) are branch 2.  Uses an
    iota-mask select (no slices / concatenate) and a two-pass centered
    variance.  Cross-lane reductions go to the XLU; essentially free while the
    kernel is HBM-bound.
    """
    rows = lax.broadcasted_iota(jnp.int32, a.shape, 0)
    in2 = rows >= half
    inv_n = 1.0 / half
    zero = jnp.zeros((), a.dtype)

    mu1 = jnp.sum(jnp.where(in2, zero, a), axis=0, keepdims=True) * inv_n
    mu2 = jnp.sum(jnp.where(in2, a, zero), axis=0, keepdims=True) * inv_n
    c = a - jnp.where(in2, mu2, mu1)
    c2 = c * c
    var1 = jnp.sum(jnp.where(in2, zero, c2), axis=0, keepdims=True) * inv_n
    var2 = jnp.sum(jnp.where(in2, c2, zero), axis=0, keepdims=True) * inv_n
    return c * lax.rsqrt(jnp.where(in2, var2, var1) + EPS)


def siamese_kernel(
    x_ref,     # (2B, D)  f32  both branches stacked on rows (resident)
    bn1_ref,   # (2, D)   f32  row0 = BN1 gamma, row1 = BN1 beta (resident)
    w1t_ref,   # (tH, D)  bf16 Linear1 weight tile, pre-transposed (streamed)
    s_ref,     # (3, tH)  f32  row0 = b1, row1 = BN2 gamma, row2 = BN2 beta
    w2_ref,    # (tH, Fp) bf16 Linear2 weight tile (streamed)
    o_ref,     # (2B, Fp) f32  partial output slab (resident over inner axis)
    xn_ref,    # (2B, D)  bf16 scratch: BN1-normalized input
):
    h_idx = pl.program_id(1)   # inner H-tile index within this parallel slice
    B = x_ref.shape[0] // 2    # static

    @pl.when(h_idx == 0)
    def _init():
        x = x_ref[...]
        xn = _bn_pair(x, B) * bn1_ref[0:1, :] + bn1_ref[1:2, :]
        xn_ref[...] = xn.astype(xn_ref.dtype)
        o_ref[...] = jnp.zeros_like(o_ref)

    # Linear1 tile + bias + ReLU.  W1 is streamed transposed (tH, D) so the
    # HBM read is contiguous; contract over the shared last axis.  bf16
    # operands, f32 accumulation on the MXU.
    h = lax.dot_general(
        xn_ref[...], w1t_ref[...],
        dimension_numbers=(((1,), (1,)), ((), ())),
        preferred_element_type=jnp.float32,
    ) + s_ref[0:1, :]
    h = jnp.maximum(h, 0.0)

    # BN2 (training mode) per branch on this hidden tile (per-feature, so it
    # tiles cleanly along H).
    hn = _bn_pair(h, B) * s_ref[1:2, :] + s_ref[2:3, :]

    # Accumulate the partial second matmul into the resident output slab.
    o_ref[...] += jnp.dot(hn.astype(w2_ref.dtype), w2_ref[...],
                          preferred_element_type=jnp.float32)


def prepare_params(params, *, tile_h=1024, num_splits=1):
    """One-time parameter prep (pad, cast to bf16, transpose W1, pack vectors).

    Call once and reuse the result across forward calls; the kernel is
    HBM-bound on the bf16 weight stream, so re-padding/casting per call would
    roughly triple the effective weight traffic.
    """
    g1, bt1, w1, b1, g2, bt2, w2, b2 = params
    D, H = w1.shape
    F = w2.shape[1]
    f32, bf16 = jnp.float32, jnp.bfloat16

    tH = min(_round_up(tile_h, 128), _round_up(H, 128))
    Hp = _round_up(H, tH * num_splits)   # equal #tiles per parallel slice
    Fp = _round_up(F, 128)

    # Padded entries are exact zeros, so padded hidden units stay zero through
    # ReLU/BN2 (gamma/beta pads are zero) and the padded W2 rows/cols
    # contribute nothing to the output.
    w1t = jnp.pad(w1.astype(f32).T, ((0, Hp - H), (0, 0))).astype(bf16)      # (Hp, D)
    w2p = jnp.pad(w2.astype(f32), ((0, Hp - H), (0, Fp - F))).astype(bf16)   # (Hp, Fp)
    bn1 = jnp.concatenate([g1.astype(f32), bt1.astype(f32)], axis=0)         # (2, D)
    pad_h = lambda v: jnp.pad(v.astype(f32), ((0, 0), (0, Hp - H)))
    stats = jnp.concatenate([pad_h(b1), pad_h(g2), pad_h(bt2)], axis=0)      # (3, Hp)
    b2 = b2.astype(f32)                                                      # (1, F)

    arrays = (bn1, w1t, stats, w2p, b2)
    arrays = jax.tree_util.tree_map(jax.device_put, arrays)
    meta = dict(D=D, H=H, F=F, tH=tH, Hp=Hp, Fp=Fp, num_splits=num_splits)
    return arrays, meta


def siamese_forward(x1, x2, prepared, *, vmem_limit_bytes=None):
    """Runs both siamese branches in one fused Pallas kernel. Returns (h1, h2)."""
    (bn1, w1t, stats, w2p, b2), meta = prepared
    B, D = x1.shape
    assert D == meta["D"]
    tH, Hp, Fp, F = meta["tH"], meta["Hp"], meta["Fp"], meta["F"]
    n_split = meta["num_splits"]
    steps = Hp // (tH * n_split)   # H tiles handled by each parallel slice

    f32 = jnp.float32
    x_both = jnp.concatenate([x1, x2], axis=0).astype(f32)   # (2B, D)

    grid_spec = pltpu.PrefetchScalarGridSpec(
        num_scalar_prefetch=0,
        grid=(n_split, steps),
        in_specs=[
            pl.BlockSpec((2 * B, D), lambda c, h: (0, 0)),                  # x (resident)
            pl.BlockSpec((2, D), lambda c, h: (0, 0)),                      # BN1 gamma/beta
            pl.BlockSpec((tH, D), lambda c, h: (c * steps + h, 0)),         # W1^T tile (contiguous)
            pl.BlockSpec((3, tH), lambda c, h: (0, c * steps + h)),         # b1/g2/bt2 tile
            pl.BlockSpec((tH, Fp), lambda c, h: (c * steps + h, 0)),        # W2 tile
        ],
        # One partial (2B, Fp) slab per parallel slice; summed in the wrapper.
        out_specs=pl.BlockSpec((None, 2 * B, Fp), lambda c, h: (c, 0, 0)),
        scratch_shapes=[pltpu.VMEM((2 * B, D), jnp.bfloat16)],
    )

    out = pl.pallas_call(
        siamese_kernel,
        out_shape=jax.ShapeDtypeStruct((n_split, 2 * B, Fp), f32),
        grid_spec=grid_spec,
        compiler_params=pltpu.CompilerParams(
            # Outer axis: independent halves of the H reduction (megacore on
            # v7x); inner axis: H-tile accumulation into the resident slab.
            dimension_semantics=("parallel", "arbitrary"),
            vmem_limit_bytes=vmem_limit_bytes,
        ),
    )(x_both, bn1, w1t, stats, w2p)

    out = out[0] if n_split == 1 else jnp.sum(out, axis=0)
    out = out[:, :F] + b2          # final bias added outside the kernel
    return out[:B], out[B:]


def init_params(key, dim, hidden, final):
    """Deterministic synthetic init (shapes match the PyTorch module)."""
    k1, k2, k3, k4, k5, k6 = jax.random.split(key, 6)
    g1 = 1.0 + 0.1 * jax.random.normal(k1, (1, dim), jnp.float32)
    bt1 = 0.1 * jax.random.normal(k2, (1, dim), jnp.float32)
    w1 = jax.random.normal(k3, (dim, hidden), jnp.float32) / jnp.sqrt(dim)
    b1 = 0.01 * jax.random.normal(k4, (1, hidden), jnp.float32)
    g2 = 1.0 + 0.1 * jax.random.normal(k5, (1, hidden), jnp.float32)
    bt2 = 0.1 * jax.random.normal(k6, (1, hidden), jnp.float32)
    k7, k8 = jax.random.split(k3)
    w2 = jax.random.normal(k7, (hidden, final), jnp.float32) / jnp.sqrt(hidden)
    b2 = 0.01 * jax.random.normal(k8, (1, final), jnp.float32)
    return (g1, bt1, w1, b1, g2, bt2, w2, b2)


def siamese_ref(x1, x2, params, matmul_dtype=jnp.float32):
    """Pure-JAX reference (PyTorch training-mode semantics).

    With matmul_dtype=jnp.bfloat16 it mirrors the kernel's bf16 matmul
    operands (f32 accumulation) for a tight structural comparison.
    """
    g1, bt1, w1, b1, g2, bt2, w2, b2 = params

    def bn(a, g, b):
        mu = jnp.mean(a, axis=0, keepdims=True)
        var = jnp.mean((a - mu) ** 2, axis=0, keepdims=True)
        return (a - mu) * lax.rsqrt(var + EPS) * g + b

    def mm(a, w):
        return jnp.dot(a.astype(matmul_dtype), w.astype(matmul_dtype),
                       preferred_element_type=jnp.float32)

    def branch(x):
        xn = bn(x, g1, bt1)
        h = jnp.maximum(mm(xn, w1) + b1, 0.0)
        hn = bn(h, g2, bt2)
        return mm(hn, w2) + b2

    return branch(x1), branch(x2)


if __name__ == "__main__":
    # Small shapes consistent with the module's [dim, hidden, final] MLP.
    B, DIM, HIDDEN, FINAL = 64, 128, 200, 32

    key = jax.random.PRNGKey(0)
    kx1, kx2, kp = jax.random.split(key, 3)
    x1 = jax.random.normal(kx1, (B, DIM), jnp.float32)
    x2 = jax.random.normal(kx2, (B, DIM), jnp.float32)
    params = init_params(kp, DIM, HIDDEN, FINAL)

    # Path 1: single reduction axis (v5e/v6e style).  tile_h=128 so the padded
    # hidden dim (256) splits into 2 grid steps, exercising streaming/accum.
    prep1 = prepare_params(params, tile_h=128, num_splits=1)
    h1, h2 = siamese_forward(x1, x2, prep1)
    jax.block_until_ready((h1, h2))
    assert h1.shape == (B, FINAL) and h2.shape == (B, FINAL)

    # Path 2: H reduction split across a leading parallel axis (v7x dual-TC
    # style); each slice owns one H tile, partial slabs summed in the wrapper.
    prep2 = prepare_params(params, tile_h=128, num_splits=2)
    h1s, h2s = siamese_forward(x1, x2, prep2)
    jax.block_until_ready((h1s, h2s))
    assert jnp.allclose(h1s, h1, atol=1e-5, rtol=1e-5), "split-grid mismatch (branch 1)"
    assert jnp.allclose(h2s, h2, atol=1e-5, rtol=1e-5), "split-grid mismatch (branch 2)"

    # Tight structural check vs a reference that uses the same bf16 matmul operands.
    r1b, r2b = siamese_ref(x1, x2, params, matmul_dtype=jnp.bfloat16)
    assert jnp.allclose(h1, r1b, atol=1e-2, rtol=1e-2), "branch 1 mismatch (bf16 ref)"
    assert jnp.allclose(h2, r2b, atol=1e-2, rtol=1e-2), "branch 2 mismatch (bf16 ref)"

    # Looser check vs the full-f32 PyTorch-semantics reference (bf16 weights in kernel).
    r1, r2 = siamese_ref(x1, x2, params)
    assert jnp.allclose(h1, r1, atol=5e-2, rtol=5e-2), "branch 1 mismatch (f32 ref)"
    assert jnp.allclose(h2, r2, atol=5e-2, rtol=5e-2), "branch 2 mismatch (f32 ref)"

    print("KERNEL_OK")
</pallas_src>

<mosaic_0001>
module attributes {stable_mosaic.version = 11 : i64} {
  func.func @siamese_kernel(%arg0: i32, %arg1: i32, %arg2: memref<128x128xf32, #tpu.memory_space<vmem>>, %arg3: memref<2x128xf32, #tpu.memory_space<vmem>>, %arg4: memref<128x128xbf16, #tpu.memory_space<vmem>>, %arg5: memref<3x128xf32, #tpu.memory_space<vmem>>, %arg6: memref<128x128xbf16, #tpu.memory_space<vmem>>, %arg7: memref<1x128x128xf32, #tpu.memory_space<vmem>>, %arg8: memref<128x128xbf16, #tpu.memory_space<vmem>>) attributes {dimension_semantics = [#tpu.dimension_semantics<parallel>, #tpu.dimension_semantics<arbitrary>], iteration_bounds = array<i64: 1, 2>, scalar_prefetch = 0 : i64, scratch_operands = 1 : i64, tpu.core_type = #tpu.core_type<tc>, window_params = [{pipeline_mode = #tpu.pipeline_mode<synchronous>, transform_indices = @transform_0, window_bounds = array<i64: 128, 128>}, {pipeline_mode = #tpu.pipeline_mode<synchronous>, transform_indices = @transform_1, window_bounds = array<i64: 2, 128>}, {transform_indices = @transform_2, window_bounds = array<i64: 128, 128>}, {transform_indices = @transform_3, window_bounds = array<i64: 3, 128>}, {transform_indices = @transform_4, window_bounds = array<i64: 128, 128>}, {transform_indices = @transform_5, window_bounds = array<i64: 1, 128, 128>}]} {
    %c0_i32 = arith.constant 0 : i32
    %0 = arith.cmpi eq, %arg1, %c0_i32 : i32
    %1 = arith.extui %0 : i1 to i32
    %c0_i32_0 = arith.constant 0 : i32
    %2 = arith.cmpi ne, %1, %c0_i32_0 : i32
    scf.if %2 {
      %c0_31 = arith.constant 0 : index
      %c0_32 = arith.constant 0 : index
      %69 = vector.load %arg2[%c0_31, %c0_32] : memref<128x128xf32, #tpu.memory_space<vmem>>, vector<128x128xf32>
      %70 = tpu.iota {dimensions = array<i32: 0>} : vector<128x128xi32>
      %c64_i32_33 = arith.constant 64 : i32
      %71 = vector.broadcast %c64_i32_33 : i32 to vector<128x128xi32>
      %72 = arith.cmpi sge, %70, %71 : vector<128x128xi32>
      %cst_34 = arith.constant 0.000000e+00 : f32
      %73 = vector.broadcast %cst_34 : f32 to vector<128x128xf32>
      %74 = arith.select %72, %73, %69 : vector<128x128xi1>, vector<128x128xf32>
      %cst_35 = arith.constant dense<0.000000e+00> : vector<128xf32>
      %75 = vector.multi_reduction <add>, %74, %cst_35 [0] : vector<128x128xf32> to vector<128xf32>
      %76 = vector.shape_cast %75 : vector<128xf32> to vector<1x128xf32>
      %cst_36 = arith.constant 1.562500e-02 : f32
      %77 = vector.broadcast %cst_36 : f32 to vector<1x128xf32>
      %78 = arith.mulf %76, %77 : vector<1x128xf32>
      %cst_37 = arith.constant 0.000000e+00 : f32
      %79 = vector.broadcast %cst_37 : f32 to vector<128x128xf32>
      %80 = arith.select %72, %69, %79 : vector<128x128xi1>, vector<128x128xf32>
      %cst_38 = arith.constant dense<0.000000e+00> : vector<128xf32>
      %81 = vector.multi_reduction <add>, %80, %cst_38 [0] : vector<128x128xf32> to vector<128xf32>
      %82 = vector.shape_cast %81 : vector<128xf32> to vector<1x128xf32>
      %cst_39 = arith.constant 1.562500e-02 : f32
      %83 = vector.broadcast %cst_39 : f32 to vector<1x128xf32>
      %84 = arith.mulf %82, %83 : vector<1x128xf32>
      %85 = vector.shape_cast %84 : vector<1x128xf32> to vector<1x128xf32>
      %86 = vector.broadcast %85 : vector<1x128xf32> to vector<128x128xf32>
      %87 = vector.shape_cast %78 : vector<1x128xf32> to vector<1x128xf32>
      %88 = vector.broadcast %87 : vector<1x128xf32> to vector<128x128xf32>
      %89 = arith.select %72, %86, %88 : vector<128x128xi1>, vector<128x128xf32>
      %90 = arith.subf %69, %89 : vector<128x128xf32>
      %91 = arith.mulf %90, %90 : vector<128x128xf32>
      %cst_40 = arith.constant 0.000000e+00 : f32
      %92 = vector.broadcast %cst_40 : f32 to vector<128x128xf32>
      %93 = arith.select %72, %92, %91 : vector<128x128xi1>, vector<128x128xf32>
      %cst_41 = arith.constant dense<0.000000e+00> : vector<128xf32>
      %94 = vector.multi_reduction <add>, %93, %cst_41 [0] : vector<128x128xf32> to vector<128xf32>
      %95 = vector.shape_cast %94 : vector<128xf32> to vector<1x128xf32>
      %cst_42 = arith.constant 1.562500e-02 : f32
      %96 = vector.broadcast %cst_42 : f32 to vector<1x128xf32>
      %97 = arith.mulf %95, %96 : vector<1x128xf32>
      %cst_43 = arith.constant 0.000000e+00 : f32
      %98 = vector.broadcast %cst_43 : f32 to vector<128x128xf32>
      %99 = arith.select %72, %91, %98 : vector<128x128xi1>, vector<128x128xf32>
      %cst_44 = arith.constant dense<0.000000e+00> : vector<128xf32>
      %100 = vector.multi_reduction <add>, %99, %cst_44 [0] : vector<128x128xf32> to vector<128xf32>
      %101 = vector.shape_cast %100 : vector<128xf32> to vector<1x128xf32>
      %cst_45 = arith.constant 1.562500e-02 : f32
      %102 = vector.broadcast %cst_45 : f32 to vector<1x128xf32>
      %103 = arith.mulf %101, %102 : vector<1x128xf32>
      %104 = vector.shape_cast %103 : vector<1x128xf32> to vector<1x128xf32>
      %105 = vector.broadcast %104 : vector<1x128xf32> to vector<128x128xf32>
      %106 = vector.shape_cast %97 : vector<1x128xf32> to vector<1x128xf32>
      %107 = vector.broadcast %106 : vector<1x128xf32> to vector<128x128xf32>
      %108 = arith.select %72, %105, %107 : vector<128x128xi1>, vector<128x128xf32>
      %cst_46 = arith.constant 9.99999974E-6 : f32
      %109 = vector.broadcast %cst_46 : f32 to vector<128x128xf32>
      %110 = arith.addf %108, %109 : vector<128x128xf32>
      %111 = math.rsqrt %110 : vector<128x128xf32>
      %112 = arith.mulf %90, %111 : vector<128x128xf32>
      %c0_47 = arith.constant 0 : index
      %c0_48 = arith.constant 0 : index
      %113 = vector.load %arg3[%c0_47, %c0_48] : memref<2x128xf32, #tpu.memory_space<vmem>>, vector<1x128xf32>
      %114 = vector.broadcast %113 : vector<1x128xf32> to vector<128x128xf32>
      %115 = arith.mulf %112, %114 : vector<128x128xf32>
      %c1_49 = arith.constant 1 : index
      %c0_50 = arith.constant 0 : index
      %116 = vector.load %arg3[%c1_49, %c0_50] : memref<2x128xf32, #tpu.memory_space<vmem>>, vector<1x128xf32>
      %117 = vector.broadcast %116 : vector<1x128xf32> to vector<128x128xf32>
      %118 = arith.addf %115, %117 : vector<128x128xf32>
      %119 = arith.truncf %118 : vector<128x128xf32> to vector<128x128xbf16>
      %c0_51 = arith.constant 0 : index
      %c0_52 = arith.constant 0 : index
      %120 = vector.load %arg8[%c0_51, %c0_52] : memref<128x128xbf16, #tpu.memory_space<vmem>>, vector<128x128xbf16>
      tpu.vector_store %arg8[%c0_51, %c0_52], %119 {strides = array<i32>} : memref<128x128xbf16, #tpu.memory_space<vmem>>, vector<128x128xbf16>,
      %cst_53 = arith.constant 0.000000e+00 : f32
      %121 = vector.broadcast %cst_53 : f32 to vector<128x128xf32>
      %c0_54 = arith.constant 0 : index
      %c0_55 = arith.constant 0 : index
      %c0_56 = arith.constant 0 : index
      %122 = vector.load %arg7[%c0_54, %c0_55, %c0_56] : memref<1x128x128xf32, #tpu.memory_space<vmem>>, vector<1x128x128xf32>
      %123 = vector.shape_cast %122 : vector<1x128x128xf32> to vector<128x128xf32>
      %124 = vector.shape_cast %121 : vector<128x128xf32> to vector<1x128x128xf32>
      tpu.vector_store %arg7[%c0_54, %c0_55, %c0_56], %124 {strides = array<i32>} : memref<1x128x128xf32, #tpu.memory_space<vmem>>, vector<1x128x128xf32>,
    } else {
    }
    %c0 = arith.constant 0 : index
    %c0_1 = arith.constant 0 : index
    %3 = vector.load %arg8[%c0, %c0_1] : memref<128x128xbf16, #tpu.memory_space<vmem>>, vector<128x128xbf16>
    %c0_2 = arith.constant 0 : index
    %c0_3 = arith.constant 0 : index
    %4 = vector.load %arg4[%c0_2, %c0_3] : memref<128x128xbf16, #tpu.memory_space<vmem>>, vector<128x128xbf16>
    %cst = arith.constant dense<0.000000e+00> : vector<128x128xf32>
    %5 = tpu.matmul %3, %4, %cst {dimension_numbers = #tpu.dot_dimension_numbers<[1], [1], [0], [0], [0, 0, 1, 0], [], []>} : vector<128x128xbf16>, vector<128x128xbf16>, vector<128x128xf32> -> vector<128x128xf32>
    %c0_4 = arith.constant 0 : index
    %c0_5 = arith.constant 0 : index
    %6 = vector.load %arg5[%c0_4, %c0_5] : memref<3x128xf32, #tpu.memory_space<vmem>>, vector<1x128xf32>
    %7 = vector.broadcast %6 : vector<1x128xf32> to vector<128x128xf32>
    %8 = arith.addf %5, %7 : vector<128x128xf32>
    %cst_6 = arith.constant 0.000000e+00 : f32
    %9 = vector.broadcast %cst_6 : f32 to vector<128x128xf32>
    %10 = arith.maximumf %8, %9 : vector<128x128xf32>
    %11 = tpu.iota {dimensions = array<i32: 0>} : vector<128x128xi32>
    %c64_i32 = arith.constant 64 : i32
    %12 = vector.broadcast %c64_i32 : i32 to vector<128x128xi32>
    %13 = arith.cmpi sge, %11, %12 : vector<128x128xi32>
    %cst_7 = arith.constant 0.000000e+00 : f32
    %14 = vector.broadcast %cst_7 : f32 to vector<128x128xf32>
    %15 = arith.select %13, %14, %10 : vector<128x128xi1>, vector<128x128xf32>
    %cst_8 = arith.constant dense<0.000000e+00> : vector<128xf32>
    %16 = vector.multi_reduction <add>, %15, %cst_8 [0] : vector<128x128xf32> to vector<128xf32>
    %17 = vector.shape_cast %16 : vector<128xf32> to vector<1x128xf32>
    %cst_9 = arith.constant 1.562500e-02 : f32
    %18 = vector.broadcast %cst_9 : f32 to vector<1x128xf32>
    %19 = arith.mulf %17, %18 : vector<1x128xf32>
    %cst_10 = arith.constant 0.000000e+00 : f32
    %20 = vector.broadcast %cst_10 : f32 to vector<128x128xf32>
    %21 = arith.select %13, %10, %20 : vector<128x128xi1>, vector<128x128xf32>
    %cst_11 = arith.constant dense<0.000000e+00> : vector<128xf32>
    %22 = vector.multi_reduction <add>, %21, %cst_11 [0] : vector<128x128xf32> to vector<128xf32>
    %23 = vector.shape_cast %22 : vector<128xf32> to vector<1x128xf32>
    %cst_12 = arith.constant 1.562500e-02 : f32
    %24 = vector.broadcast %cst_12 : f32 to vector<1x128xf32>
    %25 = arith.mulf %23, %24 : vector<1x128xf32>
    %26 = vector.shape_cast %25 : vector<1x128xf32> to vector<1x128xf32>
    %27 = vector.broadcast %26 : vector<1x128xf32> to vector<128x128xf32>
    %28 = vector.shape_cast %19 : vector<1x128xf32> to vector<1x128xf32>
    %29 = vector.broadcast %28 : vector<1x128xf32> to vector<128x128xf32>
    %30 = arith.select %13, %27, %29 : vector<128x128xi1>, vector<128x128xf32>
    %31 = arith.subf %10, %30 : vector<128x128xf32>
    %32 = arith.mulf %31, %31 : vector<128x128xf32>
    %cst_13 = arith.constant 0.000000e+00 : f32
    %33 = vector.broadcast %cst_13 : f32 to vector<128x128xf32>
    %34 = arith.select %13, %33, %32 : vector<128x128xi1>, vector<128x128xf32>
    %cst_14 = arith.constant dense<0.000000e+00> : vector<128xf32>
    %35 = vector.multi_reduction <add>, %34, %cst_14 [0] : vector<128x128xf32> to vector<128xf32>
    %36 = vector.shape_cast %35 : vector<128xf32> to vector<1x128xf32>
    %cst_15 = arith.constant 1.562500e-02 : f32
    %37 = vector.broadcast %cst_15 : f32 to vector<1x128xf32>
    %38 = arith.mulf %36, %37 : vector<1x128xf32>
    %cst_16 = arith.constant 0.000000e+00 : f32
    %39 = vector.broadcast %cst_16 : f32 to vector<128x128xf32>
    %40 = arith.select %13, %32, %39 : vector<128x128xi1>, vector<128x128xf32>
    %cst_17 = arith.constant dense<0.000000e+00> : vector<128xf32>
    %41 = vector.multi_reduction <add>, %40, %cst_17 [0] : vector<128x128xf32> to vector<128xf32>
    %42 = vector.shape_cast %41 : vector<128xf32> to vector<1x128xf32>
    %cst_18 = arith.constant 1.562500e-02 : f32
    %43 = vector.broadcast %cst_18 : f32 to vector<1x128xf32>
    %44 = arith.mulf %42, %43 : vector<1x128xf32>
    %45 = vector.shape_cast %44 : vector<1x128xf32> to vector<1x128xf32>
    %46 = vector.broadcast %45 : vector<1x128xf32> to vector<128x128xf32>
    %47 = vector.shape_cast %38 : vector<1x128xf32> to vector<1x128xf32>
    %48 = vector.broadcast %47 : vector<1x128xf32> to vector<128x128xf32>
    %49 = arith.select %13, %46, %48 : vector<128x128xi1>, vector<128x128xf32>
    %cst_19 = arith.constant 9.99999974E-6 : f32
    %50 = vector.broadcast %cst_19 : f32 to vector<128x128xf32>
    %51 = arith.addf %49, %50 : vector<128x128xf32>
    %52 = math.rsqrt %51 : vector<128x128xf32>
    %53 = arith.mulf %31, %52 : vector<128x128xf32>
    %c1 = arith.constant 1 : index
    %c0_20 = arith.constant 0 : index
    %54 = vector.load %arg5[%c1, %c0_20] : memref<3x128xf32, #tpu.memory_space<vmem>>, vector<1x128xf32>
    %55 = vector.broadcast %54 : vector<1x128xf32> to vector<128x128xf32>
    %56 = arith.mulf %53, %55 : vector<128x128xf32>
    %c2 = arith.constant 2 : index
    %c0_21 = arith.constant 0 : index
    %57 = vector.load %arg5[%c2, %c0_21] : memref<3x128xf32, #tpu.memory_space<vmem>>, vector<1x128xf32>
    %58 = vector.broadcast %57 : vector<1x128xf32> to vector<128x128xf32>
    %59 = arith.addf %56, %58 : vector<128x128xf32>
    %c0_22 = arith.constant 0 : index
    %c0_23 = arith.constant 0 : index
    %c0_24 = arith.constant 0 : index
    %60 = vector.load %arg7[%c0_22, %c0_23, %c0_24] : memref<1x128x128xf32, #tpu.memory_space<vmem>>, vector<1x128x128xf32>
    %61 = vector.shape_cast %60 : vector<1x128x128xf32> to vector<128x128xf32>
    %62 = arith.truncf %59 : vector<128x128xf32> to vector<128x128xbf16>
    %c0_25 = arith.constant 0 : index
    %c0_26 = arith.constant 0 : index
    %63 = vector.load %arg6[%c0_25, %c0_26] : memref<128x128xbf16, #tpu.memory_space<vmem>>, vector<128x128xbf16>
    %cst_27 = arith.constant dense<0.000000e+00> : vector<128x128xf32>
    %64 = tpu.matmul %62, %63, %cst_27 {dimension_numbers = #tpu.dot_dimension_numbers<[1], [0], [0], [1], [0, 0, 1, 1], [], []>} : vector<128x128xbf16>, vector<128x128xbf16>, vector<128x128xf32> -> vector<128x128xf32>
    %65 = arith.addf %61, %64 : vector<128x128xf32>
    %c0_28 = arith.constant 0 : index
    %c0_29 = arith.constant 0 : index
    %c0_30 = arith.constant 0 : index
    %66 = vector.load %arg7[%c0_28, %c0_29, %c0_30] : memref<1x128x128xf32, #tpu.memory_space<vmem>>, vector<1x128x128xf32>
    %67 = vector.shape_cast %66 : vector<1x128x128xf32> to vector<128x128xf32>
    %68 = vector.shape_cast %65 : vector<128x128xf32> to vector<1x128x128xf32>
    tpu.vector_store %arg7[%c0_28, %c0_29, %c0_30], %68 {strides = array<i32>} : memref<1x128x128xf32, #tpu.memory_space<vmem>>, vector<1x128x128xf32>,
    return
  }
  func.func @transform_0(%arg0: i32, %arg1: i32) -> (i32, i32) {
    %c0_i32 = arith.constant 0 : i32
    %c0_i32_0 = arith.constant 0 : i32
    %c0_i32_1 = arith.constant 0 : i32
    return %c0_i32, %c0_i32_0 : i32, i32
  }
  func.func @transform_1(%arg0: i32, %arg1: i32) -> (i32, i32) {
    %c0_i32 = arith.constant 0 : i32
    %c0_i32_0 = arith.constant 0 : i32
    %c0_i32_1 = arith.constant 0 : i32
    return %c0_i32, %c0_i32_0 : i32, i32
  }
  func.func @transform_2(%arg0: i32, %arg1: i32) -> (i32, i32) {
    %c2_i32 = arith.constant 2 : i32
    %0 = arith.muli %arg0, %c2_i32 : i32
    %1 = arith.addi %0, %arg1 : i32
    %c0_i32 = arith.constant 0 : i32
    %c0_i32_0 = arith.constant 0 : i32
    return %1, %c0_i32 : i32, i32
  }
  func.func @transform_3(%arg0: i32, %arg1: i32) -> (i32, i32) {
    %c2_i32 = arith.constant 2 : i32
    %0 = arith.muli %arg0, %c2_i32 : i32
    %1 = arith.addi %0, %arg1 : i32
    %c0_i32 = arith.constant 0 : i32
    %c0_i32_0 = arith.constant 0 : i32
    return %c0_i32, %1 : i32, i32
  }
  func.func @transform_4(%arg0: i32, %arg1: i32) -> (i32, i32) {
    %c2_i32 = arith.constant 2 : i32
    %0 = arith.muli %arg0, %c2_i32 : i32
    %1 = arith.addi %0, %arg1 : i32
    %c0_i32 = arith.constant 0 : i32
    %c0_i32_0 = arith.constant 0 : i32
    return %1, %c0_i32 : i32, i32
  }
  func.func @transform_5(%arg0: i32, %arg1: i32) -> (i32, i32, i32) {
    %c0_i32 = arith.constant 0 : i32
    %c0_i32_0 = arith.constant 0 : i32
    %c0_i32_1 = arith.constant 0 : i32
    return %arg0, %c0_i32, %c0_i32_0 : i32, i32, i32
  }
}

</mosaic_0001>

<bundles_post_ra>
// kernel: tpu_custom_call.1
= control target key start
LH: loop header
LB: loop body
LE: loop exit
PB: predicated region body
PF: predicated region fallthrough
CT: control target
= control target key end

     0   :  { %s2814_s0 = inlined_call_operand.hbm [shape: f32[128,128], index: 0, kind: input, shape index: {}]   ;;  %s2815_s1 = inlined_call_operand.hbm [shape: f32[2,128], index: 1, kind: input, shape index: {}]   ;;  %s2816_s2 = inlined_call_operand.hbm [shape: bf16[256,128], index: 2, kind: input, shape index: {}]   ;;  %s2817_s3 = inlined_call_operand.hbm [shape: f32[3,256], index: 3, kind: input, shape index: {}]   ;;  %s2818_s4 = inlined_call_operand.hbm [shape: bf16[256,128], index: 4, kind: input, shape index: {}]   ;;  %s2819_s5 = inlined_call_operand.hbm [shape: f32[1,128,128], index: 5, kind: output, shape index: {}]  }
   0x1   :  { %2823 = sst [smem:[#allocation18_spill]] %s2814_s0 }
   0x2   :  { %2824 = sst [smem:[#allocation19_spill]] %s2816_s2 }
   0x3   :  { %10 = vsyncpa [#allocation4], 0 }
   0x4   :  { %11 = vsyncpa [#allocation7], 0 }
   0x5   :  { %12 = vsyncpa [#allocation5], 0  ;;  %s2395_s18 = smov 0   ;;  %s2397_s19 = smov 0  }
   0x6   :  { %s2399_s20 = smov 0   ;;  %s2401_s21 = smov 0  }
   0x7   :  { %s2403_s22 = smov 0   ;;  %s2405_s23 = smov 0  }
   0x8 LB: > { %s2424_s24 = sadd.s32 4294967295, %s2350_s23   ;;  %s83_s25 = sadd.s32 1, %s2338_s20  ;;  %s2350_s23 = sphi %s2405_s23, %s18_s23   ;;  %s2346_s22 = sphi %s2403_s22, %s2844_s22   ;;  %s2342_s21 = sphi %s2401_s21, %s2843_s21   ;;  %s2338_s20 = sphi %s2399_s20, %s2842_s20   ;;  %s2334_s19 = sphi %s2397_s19, %s2841_s19   ;;  %s2330_s18 = sphi %s2395_s18, %s2840_s18  }
   0x9   : > { %p90_p0 = scmp.ne.s32.totalorder %s2338_s20, %s2334_s19  ;;  %p91_p1 = scmp.eq.s32.totalorder %s2350_s23, 0 }
   0xa   : > { %p96_p2 = scmp.ne.s32.totalorder %s2334_s19, %s2330_s18  ;;  %p2820_p3 = scmp.eq.s32.totalorder %s2424_s24, 0 }
   0xb   : > { %p92_p4 = por %p91_p1, %p90_p0  ;;  %p1767_p5 = scmp.ge.s32.totalorder %s2350_s23, 1 }
   0xc   : > { %p2435_p6 = por %p2820_p3, %p96_p2  ;;  %p193_p7 = scmp.lt.s32.totalorder %s2350_s23, 3 }
   0xd   : > { %s2352_s28 = smov [#allocation3]   ;;  %p2033_p10 = scmp.lt.s32.totalorder %s2350_s23, 2 }
   0xe   : > { %p2440_p8 = pnand %p1767_p5, %p193_p7  ;;  %s205_s29 = sshll.u32 %s2352_s28, 4  ;;  %s206_s29 = int_to_ptr.vmem [resolvable:$true] %s205_s29 }
   0xf   : > { %p2453_p12 = pnand %p2033_p10, %p92_p4  ;;  %s27_s7 = sadd.s32 1, %s2346_s22 }
  0x10   : > { %p2014_p9 = pneg %p2440_p8  ;;  %s2139_s8 = scalar_lea.vmem %s206_s29, 2048 }
  0x11   : > { %p2140_p0 = scmp.ne.s32.totalorder %s206_s29, %s2139_s8  ;;  %p2147_p5 = scmp.lt.s32.totalorder %s206_s29, %s206_s29 }
  0x12   : > { %p2449_p11 = pnand %p2014_p9, %p2820_p3  ;;  %p2148_p7 = scmp.lt.s32.totalorder %s2139_s8, %s2139_s8 }
  0x14   : > { %p2130_p13 = pneg %p2449_p11  ;;  %p2149_p9 = por %p2148_p7, %p2147_p5 }
  0x16   : > { %p2142_p1 = pnand %p2140_p0, %p2130_p13 }
  0x18   : > { %p2143_p2 = pneg %p2142_p1 }
  0x1a   : > { %p2150_p3 = pnand %p2149_p9, %p2143_p2 }
  0x1c   : > { %2153 = shalt.err (!%p2150_p3)
}
  0x1d   : > { %s2353_s9 = smov 128   ;;  %s2354_s10 = smov 8  }
  0x1e   : > { %s2829_s0 = sld [smem:[#allocation18_spill]]  ;;  %p28_p4 = scmp.ge.s32.totalorder %s27_s7, 2 }
  0x1f   : > { %s230_s13 = sand.u32 1, %s2350_s23   ;;  %s232_s14 = sand.u32 1, %s2338_s20  }
  0x20   : > { %s2846_s7 = smov (%p28_p4, %s27_s7), 0  ;;  %s2472_s15 = sshll.u32 %s232_s14, 6 }
  0x21   : > { %2830 = sst [smem:[#allocation16_spill]] %s2846_s7  ;;  %s80_s16 = ssub.s32 %s2346_s22, %s2846_s7 }
  0x22   : > { %p81_p3 = scmp.eq.s32.totalorder %s80_s16, 0  ;;  %s2821_s17 = sshll.u32 %s2346_s22, 10 }
  0x23   : > { %s2831_s2 = sld [smem:[#allocation19_spill]]  ;;  %s1774_s11 = sshll.u32 %s232_s14, 2 }
  0x24   : > { %2017 = dma.hbm_to_vmem [thread:$0]  (!%p2449_p11), %s2829_s0, 2048, %s206_s29, [#allocation4], %s2353_s9, %s2353_s9, %s2354_s10  }
  0x25   : > { %s234_s29 = scalar_lea.vmem [#allocation8], %s2472_s15  ;;  %s2488_s12 = scalar_lea.sflag [#allocation4], %s230_s13 }
  0x26   : > { %s243_s9 = sshll.u32 %s234_s29, 4  ;;  %p2156_p10 = pneg %p2453_p12  ;;  %s244_s9 = int_to_ptr.vmem [resolvable:$true] %s243_s9 }
  0x27   : > { %s2486_s10 = scalar_select %p81_p3, %s2338_s20, %s83_s25  }
  0x28   : > { %s2167_s0 = scalar_lea.vmem %s244_s9, 1024  ;;  %s2355_s16 = smov [#allocation8]  }
  0x29   : > { %s242_s8 = scalar_lea.hbm %s2831_s2, %s2821_s17  ;;  %2832 = sst [smem:[#allocation17_spill]] %s2486_s10 }
  0x2a   : > { %p2168_p0 = scmp.ne.s32.totalorder %s244_s9, %s2167_s0  ;;  %s2172_s18 = sshll.u32 %s2355_s16, 4  ;;  %s2173_s18 = int_to_ptr.vmem [resolvable:$false] %s2172_s18 }
  0x2b   : > { %s2174_s28 = scalar_lea.vmem %s2173_s18, 2048  ;;  %p2175_p5 = scmp.lt.s32.totalorder %s244_s9, %s2173_s18 }
  0x2c   : > { %p2170_p1 = pnand %p2168_p0, %p2156_p10  ;;  %p2176_p7 = scmp.lt.s32.totalorder %s2174_s28, %s2167_s0 }
  0x2e   : > { %p2171_p2 = pneg %p2170_p1  ;;  %p2177_p9 = por %p2176_p7, %p2175_p5 }
  0x30   : > { %p2178_p4 = pnand %p2177_p9, %p2171_p2 }
  0x32   : > { %2181 = shalt.err (!%p2178_p4)
}
  0x33   : > { %s2356_s25 = smov 64   ;;  %s2357_s13 = smov 4  }
  0x34   : > { %2024 = dma.hbm_to_vmem [thread:$0]  (!%p2453_p12), %s242_s8, 1024, %s244_s9, %s2488_s12, %s2356_s25, %s2356_s25, %s2357_s13  }
  0x35   : > { %s1775_s14 = sshll.u32 %s2346_s22, 6  ;;  %s257_s0 = scalar_lea.vmem [#allocation9], %s1774_s11 }
  0x36   : > { %s264_s18 = scalar_lea.hbm %s2817_s3, %s1775_s14  ;;  %s266_s28 = sshll.u32 %s257_s0, 4  ;;  %s267_s28 = int_to_ptr.vmem [resolvable:$true] %s266_s28 }
  0x37   : > { %s2195_s17 = scalar_lea.vmem %s267_s28, 64  ;;  %s2358_s2 = smov [#allocation9]  }
  0x38   : > { %p2196_p3 = scmp.ne.s32.totalorder %s267_s28, %s2195_s17  ;;  %s2200_s7 = sshll.u32 %s2358_s2, 4  ;;  %s2201_s7 = int_to_ptr.vmem [resolvable:$false] %s2200_s7 }
  0x39   : > { %s2202_s10 = scalar_lea.vmem %s2201_s7, 128  ;;  %p2203_p2 = scmp.lt.s32.totalorder %s267_s28, %s2201_s7 }
  0x3a   : > { %p2198_p0 = pnand %p2196_p3, %p2156_p10  ;;  %p2204_p5 = scmp.lt.s32.totalorder %s2202_s10, %s2195_s17 }
  0x3c   : > { %p2199_p1 = pneg %p2198_p0  ;;  %p2205_p7 = por %p2204_p5, %p2203_p2 }
  0x3e   : > { %p2206_p9 = pnand %p2205_p7, %p2199_p1 }
  0x40   : > { %2209 = shalt.err (!%p2206_p9)
}
  0x41   : > { %2027 = dma.hbm_to_vmem [thread:$0]  (!%p2453_p12), %s264_s18, 64, %s267_s28, %s2488_s12  }
  0x42   : > { %s2359_s8 = smov [#allocation6]   ;;  %s2833_s11 = sshll.u32 %s2346_s22, 10 }
  0x43   : > { %s219_s9 = sshll.u32 %s2359_s8, 4  ;;  %s2516_s2 = scalar_lea.hbm %s2818_s4, %s2833_s11  ;;  %s220_s9 = int_to_ptr.vmem [resolvable:$true] %s219_s9 }
  0x44   : > { %s2221_s7 = scalar_lea.vmem %s220_s9, 32  ;;  %p2229_p1 = scmp.lt.s32.totalorder %s220_s9, %s220_s9 }
  0x45   : > { %p2222_p4 = scmp.ne.s32.totalorder %s220_s9, %s2221_s7  ;;  %p2230_p2 = scmp.lt.s32.totalorder %s2221_s7, %s2221_s7 }
  0x47   : > { %p2224_p3 = pnand %p2222_p4, %p2130_p13  ;;  %p2231_p5 = por %p2230_p2, %p2229_p1 }
  0x49   : > { %p2225_p0 = pneg %p2224_p3 }
  0x4b   : > { %p2232_p7 = pnand %p2231_p5, %p2225_p0 }
  0x4d   : > { %2235 = shalt.err (!%p2232_p7)
}
  0x4e   : > { %2020 = dma.hbm_to_vmem [thread:$0]  (!%p2449_p11), %s2815_s1, 32, %s220_s9, [#allocation7]  }
  0x4f   : > { %s277_s16 = scalar_lea.vmem [#allocation10], %s2472_s15  ;;  %s2360_s28 = smov [#allocation10]  }
  0x50   : > { %s286_s18 = sshll.u32 %s277_s16, 4  ;;  %s2254_s8 = sshll.u32 %s2360_s28, 4  ;;  %s287_s18 = int_to_ptr.vmem [resolvable:$true] %s286_s18  ;;  %s2255_s8 = int_to_ptr.vmem [resolvable:$false] %s2254_s8 }
  0x51   : > { %s2249_s0 = scalar_lea.vmem %s287_s18, 1024  ;;  %s2256_s11 = scalar_lea.vmem %s2255_s8, 2048 }
  0x52   : > { %p2250_p9 = scmp.ne.s32.totalorder %s287_s18, %s2249_s0  ;;  %p2257_p3 = scmp.lt.s32.totalorder %s287_s18, %s2255_s8 }
  0x53   : > { %p2258_p0 = scmp.lt.s32.totalorder %s2256_s11, %s2249_s0 }
  0x54   : > { %p2252_p13 = pnand %p2250_p9, %p2156_p10 }
  0x55   : > { %p2259_p1 = por %p2258_p0, %p2257_p3 }
  0x56   : > { %p2253_p4 = pneg %p2252_p13 }
  0x58   : > { %p2260_p2 = pnand %p2259_p1, %p2253_p4 }
  0x5a   : > { %2263 = shalt.err (!%p2260_p2)
}
  0x5b   : > { %2030 = dma.hbm_to_vmem [thread:$0]  (!%p2453_p12), %s2516_s2, 1024, %s287_s18, %s2488_s12, %s2356_s25, %s2356_s25, %s2357_s13  }
  0x5c   : > { %298 = sbr.rel (%p2440_p8) target bundleno = 797 (0x31d), region = 40  ;;  %p2834_p11 = scmp.eq.s32.totalorder (!%p2440_p8), %s2424_s24, 0 }
  0x61   : > { %2313 = dma.done.wait (%p2834_p11), [#allocation4], 2048   ;;  %p2835_p10 = pmov %p2834_p11 }
  0x63   : > { %2315 = vsyncadd (%p2835_p10), [#allocation4], 4294965248  ;;  %p2836_p5 = pmov %p2835_p10 }
  0x65   : > { %2317 = dma.done.wait (%p2836_p5), [#allocation7], 32   ;;  %p2837_p7 = pmov %p2836_p5 }
  0x66   : > { %s308_s30 = sand.u32 1, %s2424_s24   ;;  %s310_s6 = sand.u32 1, %s2334_s19  }
  0x67   : > { %2319 = vsyncadd (%p2837_p7), [#allocation7], 4294967264  ;;  %s1782_s15 = sshll.u32 %s310_s6, 6  ;;  %s309_s27 = scalar_lea.sflag [#allocation4], %s308_s30 }
  0x68   : > { %s2549_s12 = scalar_lea.vmem [#allocation8], %s1782_s15 }
  0x69   : > { %2321 = dma.done.wait (%p2435_p6), %s309_s27, 2112  }
  0x6a   : > { %2323 = vsyncadd (%p2435_p6), %s309_s27, 4294965184  ;;  %s1783_s25 = sshll.u32 %s310_s6, 2  ;;  %s2557_s9 = scalar_lea.vmem [#allocation10], %s1782_s15 }
  0x6b   : > { %s2555_s13 = scalar_lea.vmem [#allocation9], %s1783_s25  ;;  %p1785_p8 = scmp.ne.s32.totalorder %s2342_s21, 0 }
  0x6d   : > { %374 = sbr.rel (%p1785_p8) target bundleno = 210 (0xd2), region = 64 }
  0x72   : > { %v375_v0 = vld [vmem:[#allocation3] sm:$0xff]  ;;  %v376_v1 = vld [vmem:[#allocation3 + $0x8] sm:$0xff]  ;;  %v377_v2 = vld [vmem:[#allocation3 + $0x10] sm:$0xff]  ;;  %v2361_v4 = vmov 0.0  }
  0x73   : > { %v440_v3 = vadd.f32 %v376_v1, %v375_v0  ;;  %810 = vst [vmem:[#allocation11] sm:$0xff] %v2361_v4  ;;  %811 = vst [vmem:[#allocation11 + $0x8] sm:$0xff] %v2361_v4  ;;  %v378_v5 = vld [vmem:[#allocation3 + $0x18] sm:$0xff]  ;;  %v383_v7 = vld [vmem:[#allocation3 + $0x40] sm:$0xff] }
  0x74   : > { %812 = vst [vmem:[#allocation11 + $0x10] sm:$0xff] %v2361_v4  ;;  %813 = vst [vmem:[#allocation11 + $0x18] sm:$0xff] %v2361_v4  ;;  %v384_v8 = vld [vmem:[#allocation3 + $0x48] sm:$0xff]  ;;  %v379_v9 = vld [vmem:[#allocation3 + $0x20] sm:$0xff] }
  0x75   : > { %814 = vst [vmem:[#allocation11 + $0x20] sm:$0xff] %v2361_v4  ;;  %815 = vst [vmem:[#allocation11 + $0x28] sm:$0xff] %v2361_v4  ;;  %v441_v6 = vadd.f32 %v440_v3, %v377_v2  ;;  %v385_v10 = vld [vmem:[#allocation3 + $0x50] sm:$0xff]  ;;  %v486_v11 = vadd.f32 %v384_v8, %v383_v7  ;;  %v386_v13 = vld [vmem:[#allocation3 + $0x58] sm:$0xff] }
  0x76   : > { %816 = vst [vmem:[#allocation11 + $0x30] sm:$0xff] %v2361_v4  ;;  %817 = vst [vmem:[#allocation11 + $0x38] sm:$0xff] %v2361_v4  ;;  %v380_v14 = vld [vmem:[#allocation3 + $0x28] sm:$0xff]  ;;  %v387_v17 = vld [vmem:[#allocation3 + $0x60] sm:$0xff] }
  0x77   : > { %818 = vst [vmem:[#allocation11 + $0x40] sm:$0xff] %v2361_v4  ;;  %819 = vst [vmem:[#allocation11 + $0x48] sm:$0xff] %v2361_v4  ;;  %v442_v12 = vadd.f32 %v441_v6, %v378_v5  ;;  %v487_v15 = vadd.f32 %v486_v11, %v385_v10  ;;  %v381_v18 = vld [vmem:[#allocation3 + $0x30] sm:$0xff]  ;;  %v388_v21 = vld [vmem:[#allocation3 + $0x68] sm:$0xff] }
  0x78   : > { %820 = vst [vmem:[#allocation11 + $0x50] sm:$0xff] %v2361_v4  ;;  %821 = vst [vmem:[#allocation11 + $0x58] sm:$0xff] %v2361_v4  ;;  %v382_v22 = vld [vmem:[#allocation3 + $0x38] sm:$0xff]  ;;  %v389_v25 = vld [vmem:[#allocation3 + $0x70] sm:$0xff] }
  0x79   : > { %822 = vst [vmem:[#allocation11 + $0x60] sm:$0xff] %v2361_v4  ;;  %823 = vst [vmem:[#allocation11 + $0x68] sm:$0xff] %v2361_v4  ;;  %v443_v16 = vadd.f32 %v442_v12, %v379_v9  ;;  %v488_v19 = vadd.f32 %v487_v15, %v386_v13  ;;  %v390_v28 = vld [vmem:[#allocation3 + $0x78] sm:$0xff] }
  0x7a   : > { %824 = vst [vmem:[#allocation11 + $0x70] sm:$0xff] %v2361_v4  ;;  %825 = vst [vmem:[#allocation11 + $0x78] sm:$0xff] %v2361_v4 }
  0x7b   : > { %v444_v20 = vadd.f32 %v443_v16, %v380_v14  ;;  %v489_v23 = vadd.f32 %v488_v19, %v387_v17 }
  0x7d   : > { %v445_v24 = vadd.f32 %v444_v20, %v381_v18  ;;  %v490_v26 = vadd.f32 %v489_v23, %v388_v21 }
  0x7f   : > { %v446_v27 = vadd.f32 %v445_v24, %v382_v22  ;;  %v491_v29 = vadd.f32 %v490_v26, %v389_v25 }
  0x81   : > { %v455_v30 = vrot.slane %v446_v27, 4  ;;  %v492_v31 = vadd.f32 %v491_v29, %v390_v28 }
  0x83   : > { %v456_v32 = vadd.f32 %v455_v30, %v446_v27  ;;  %v493_v33 = vrot.slane %v492_v31, 4 }
  0x85   : > { %v457_v34 = vrot.slane %v456_v32, 2  ;;  %v494_v35 = vadd.f32 %v493_v33, %v492_v31 }
  0x87   : > { %v458_v36 = vadd.f32 %v457_v34, %v456_v32  ;;  %v495_v37 = vrot.slane %v494_v35, 2 }
  0x89   : > { %v459_v38 = vrot.slane %v458_v36, 1  ;;  %v496_v39 = vadd.f32 %v495_v37, %v494_v35 }
  0x8b   : > { %v460_v40 = vadd.f32 %v459_v38, %v458_v36  ;;  %v497_v41 = vrot.slane %v496_v39, 1 }
  0x8d   : > { %v461_v42 = vmul.f32 0.015625, %v460_v40  ;;  %v498_v43 = vadd.f32 %v497_v41, %v496_v39 }
  0x8f   : > { %v2560_v44 = vsub.f32 %v375_v0, %v461_v42  ;;  %v2562_v45 = vsub.f32 %v376_v1, %v461_v42  ;;  %v2564_v46 = vsub.f32 %v377_v2, %v461_v42  ;;  %v2566_v47 = vsub.f32 %v378_v5, %v461_v42 }
  0x90   : > { %v2568_v48 = vsub.f32 %v379_v9, %v461_v42  ;;  %v2576_v52 = vsub.f32 %v380_v14, %v461_v42  ;;  %v499_v55 = vmul.f32 0.015625, %v498_v43  ;;  %v522_v56 = vsub.f32 %v381_v18, %v461_v42 }
  0x91   : > { %v532_v49 = vmul.f32 %v2560_v44, %v2560_v44  ;;  %v533_v50 = vmul.f32 %v2562_v45, %v2562_v45  ;;  %v534_v51 = vmul.f32 %v2564_v46, %v2564_v46  ;;  %v535_v53 = vmul.f32 %v2566_v47, %v2566_v47 }
  0x92   : > { %v536_v57 = vmul.f32 %v2568_v48, %v2568_v48  ;;  %v2582_v59 = vsub.f32 %v383_v7, %v499_v55  ;;  %v2584_v60 = vsub.f32 %v384_v8, %v499_v55  ;;  %v2586_v61 = vsub.f32 %v385_v10, %v499_v55 }
  0x93   : > { %v564_v54 = vadd.f32 %v533_v50, %v532_v49  ;;  %v523_v62 = vsub.f32 %v382_v22, %v461_v42  ;;  %v537_v63 = vmul.f32 %v2576_v52, %v2576_v52  ;;  %v2590_v0 = vsub.f32 %v386_v13, %v499_v55  ;;  %v1786_v49 = vld [vmem:[#allocation6] ss:$0 sm:$0xff] }
  0x94   : > { %v2592_v2 = vsub.f32 %v387_v17, %v499_v55  ;;  %v540_v3 = vmul.f32 %v2582_v59, %v2582_v59  ;;  %v541_v4 = vmul.f32 %v2584_v60, %v2584_v60  ;;  %v538_v5 = vmul.f32 %v522_v56, %v522_v56 }
  0x95   : > { %v565_v58 = vadd.f32 %v564_v54, %v534_v51  ;;  %v542_v6 = vmul.f32 %v2586_v61, %v2586_v61  ;;  %v2600_v8 = vsub.f32 %v388_v21, %v499_v55  ;;  %v543_v9 = vmul.f32 %v2590_v0, %v2590_v0 }
  0x96   : > { %v610_v10 = vadd.f32 %v541_v4, %v540_v3  ;;  %v539_v11 = vmul.f32 %v523_v62, %v523_v62  ;;  %v2604_v13 = vsub.f32 %v389_v25, %v499_v55  ;;  %v544_v14 = vmul.f32 %v2592_v2, %v2592_v2 }
  0x97   : > { %v566_v1 = vadd.f32 %v565_v58, %v535_v53  ;;  %v2608_v17 = vsub.f32 %v390_v28, %v499_v55  ;;  %v545_v18 = vmul.f32 %v2600_v8, %v2600_v8  ;;  %v1787_v55 = vld [vmem:[#allocation6 + $0x1] ss:$0 sm:$0xff] }
  0x98   : > { %v611_v15 = vadd.f32 %v610_v10, %v542_v6  ;;  %v546_v21 = vmul.f32 %v2604_v13, %v2604_v13 }
  0x99   : > { %v567_v7 = vadd.f32 %v566_v1, %v536_v57  ;;  %v547_v24 = vmul.f32 %v2608_v17, %v2608_v17 }
  0x9a   : > { %v612_v19 = vadd.f32 %v611_v15, %v543_v9 }
  0x9b   : > { %v568_v12 = vadd.f32 %v567_v7, %v537_v63 }
  0x9c   : > { %v613_v22 = vadd.f32 %v612_v19, %v544_v14 }
  0x9d   : > { %v569_v16 = vadd.f32 %v568_v12, %v538_v5 }
  0x9e   : > { %v614_v25 = vadd.f32 %v613_v22, %v545_v18 }
  0x9f   : > { %v570_v20 = vadd.f32 %v569_v16, %v539_v11 }
  0xa0   : > { %v615_v27 = vadd.f32 %v614_v25, %v546_v21 }
  0xa1   : > { %v579_v23 = vrot.slane %v570_v20, 4 }
  0xa2   : > { %v616_v30 = vadd.f32 %v615_v27, %v547_v24 }
  0xa3   : > { %v580_v26 = vadd.f32 %v579_v23, %v570_v20 }
  0xa4   : > { %v617_v31 = vrot.slane %v616_v30, 4 }
  0xa5   : > { %v581_v29 = vrot.slane %v580_v26, 2 }
  0xa6   : > { %v618_v33 = vadd.f32 %v617_v31, %v616_v30 }
  0xa7   : > { %v582_v28 = vadd.f32 %v581_v29, %v580_v26 }
  0xa8   : > { %v619_v35 = vrot.slane %v618_v33, 2 }
  0xa9   : > { %v583_v32 = vrot.slane %v582_v28, 1 }
  0xaa   : > { %v620_v37 = vadd.f32 %v619_v35, %v618_v33 }
  0xab   : > { %v584_v34 = vadd.f32 %v583_v32, %v582_v28 }
  0xac   : > { %v621_v39 = vrot.slane %v620_v37, 1 }
  0xad   : > { %v585_v36 = vmul.f32 0.015625, %v584_v34 }
  0xae   : > { %v622_v40 = vadd.f32 %v621_v39, %v620_v37 }
  0xaf   : > { %v640_v38 = vadd.f32 1e-05, %v585_v36 }
  0xb0   : > { %v623_v41 = vmul.f32 0.015625, %v622_v40 }
  0xb1   : > { %2096 = vrsqrt.f32 %v640_v38 }
  0xb2   : > { %v648_v42 = vadd.f32 1e-05, %v623_v41 }
  0xb4   : > { %2098 = vrsqrt.f32 %v648_v42 }
  0xbe   : > { %v2097_v43 = vpop.eup %2096 }
  0xbf   : > { %v672_v50 = vmul.f32 %v2097_v43, %v2560_v44  ;;  %v673_v51 = vmul.f32 %v2097_v43, %v2562_v45  ;;  %v674_v53 = vmul.f32 %v2097_v43, %v2564_v46  ;;  %v675_v54 = vmul.f32 %v2097_v43, %v2566_v47 }
  0xc0   : > { %v676_v57 = vmul.f32 %v2097_v43, %v2568_v48  ;;  %v677_v58 = vmul.f32 %v2097_v43, %v2576_v52  ;;  %v678_v63 = vmul.f32 %v2097_v43, %v522_v56  ;;  %v679_v1 = vmul.f32 %v2097_v43, %v523_v62 }
  0xc1   : > { %v693_v3 = vmul.f32 %v1786_v49, %v672_v50  ;;  %v694_v4 = vmul.f32 %v1786_v49, %v673_v51  ;;  %v695_v5 = vmul.f32 %v1786_v49, %v674_v53  ;;  %v696_v6 = vmul.f32 %v1786_v49, %v675_v54  ;;  %v2099_v47 = vpop.eup %2098 }
  0xc2   : > { %v697_v7 = vmul.f32 %v1786_v49, %v676_v57  ;;  %v698_v9 = vmul.f32 %v1786_v49, %v677_v58  ;;  %v699_v44 = vmul.f32 %v1786_v49, %v678_v63  ;;  %v700_v10 = vmul.f32 %v1786_v49, %v679_v1 }
  0xc3   : > { %v714_v45 = vadd.f32 %v1787_v55, %v693_v3  ;;  %v715_v11 = vadd.f32 %v1787_v55, %v694_v4  ;;  %v716_v46 = vadd.f32 %v1787_v55, %v695_v5  ;;  %v717_v12 = vadd.f32 %v1787_v55, %v696_v6 }
  0xc4   : > { %v718_v14 = vadd.f32 %v1787_v55, %v697_v7  ;;  %v719_v15 = vadd.f32 %v1787_v55, %v698_v9  ;;  %v720_v48 = vadd.f32 %v1787_v55, %v699_v44  ;;  %v721_v16 = vadd.f32 %v1787_v55, %v700_v10 }
  0xc5   : > { %v1856_v52 = vpack.c.bf16 %v715_v11, %v714_v45  ;;  %v1861_v56 = vpack.c.bf16 %v717_v12, %v716_v46  ;;  %v680_v62 = vmul.f32 %v2099_v47, %v2582_v59  ;;  %v681_v18 = vmul.f32 %v2099_v47, %v2584_v60 }
  0xc6   : > { %v1866_v19 = vpack.c.bf16 %v719_v15, %v718_v14  ;;  %v1871_v20 = vpack.c.bf16 %v721_v16, %v720_v48  ;;  %v682_v21 = vmul.f32 %v2099_v47, %v2586_v61  ;;  %v683_v22 = vmul.f32 %v2099_v47, %v2590_v0 }
  0xc7   : > { %1857 = vst [vmem:[#allocation2] sm:$0xff] %v1856_v52   ;;  %1893 = vst [vmem:[#allocation2 + $0x8] sm:$0xff] %v1861_v56   ;;  %v701_v23 = vmul.f32 %v1786_v49, %v680_v62  ;;  %v702_v24 = vmul.f32 %v1786_v49, %v681_v18  ;;  %v684_v25 = vmul.f32 %v2099_v47, %v2592_v2 }
  0xc8   : > { %v685_v26 = vmul.f32 %v2099_v47, %v2600_v8  ;;  %1894 = vst [vmem:[#allocation2 + $0x10] sm:$0xff] %v1866_v19   ;;  %1895 = vst [vmem:[#allocation2 + $0x18] sm:$0xff] %v1871_v20   ;;  %v703_v27 = vmul.f32 %v1786_v49, %v682_v21  ;;  %v704_v59 = vmul.f32 %v1786_v49, %v683_v22 }
  0xc9   : > { %v686_v60 = vmul.f32 %v2099_v47, %v2604_v13  ;;  %v687_v29 = vmul.f32 %v2099_v47, %v2608_v17  ;;  %v722_v30 = vadd.f32 %v1787_v55, %v701_v23  ;;  %v723_v61 = vadd.f32 %v1787_v55, %v702_v24 }
  0xca   : > { %v705_v28 = vmul.f32 %v1786_v49, %v684_v25  ;;  %v706_v0 = vmul.f32 %v1786_v49, %v685_v26  ;;  %v724_v31 = vadd.f32 %v1787_v55, %v703_v27  ;;  %v725_v32 = vadd.f32 %v1787_v55, %v704_v59 }
  0xcb   : > { %v707_v33 = vmul.f32 %v1786_v49, %v686_v60  ;;  %v708_v34 = vmul.f32 %v1786_v49, %v687_v29  ;;  %v1876_v35 = vpack.c.bf16 %v723_v61, %v722_v30 }
  0xcc   : > { %v726_v2 = vadd.f32 %v1787_v55, %v705_v28  ;;  %v727_v36 = vadd.f32 %v1787_v55, %v706_v0  ;;  %v1881_v8 = vpack.c.bf16 %v725_v32, %v724_v31 }
  0xcd   : > { %v728_v37 = vadd.f32 %v1787_v55, %v707_v33  ;;  %v729_v38 = vadd.f32 %v1787_v55, %v708_v34  ;;  %1896 = vst [vmem:[#allocation2 + $0x20] sm:$0xff] %v1876_v35  }
  0xce   : > { %v1886_v39 = vpack.c.bf16 %v727_v36, %v726_v2  ;;  %1897 = vst [vmem:[#allocation2 + $0x28] sm:$0xff] %v1881_v8  }
  0xcf   : > { %v1891_v13 = vpack.c.bf16 %v729_v38, %v728_v37 }
  0xd0   : > { %1898 = vst [vmem:[#allocation2 + $0x30] sm:$0xff] %v1886_v39  }
  0xd1   : > { %1899 = vst [vmem:[#allocation2 + $0x38] sm:$0xff] %v1891_v13  }
  0xd2 PF: > { %v2100_v17 = vld [vmem:[%s2549_s12 + $0x38] sm:$0xff]   ;;  %v2101_v40 = vld [vmem:[%s2549_s12 + $0x30] sm:$0xff]   ;;  %v2102_v41 = vld [vmem:[%s2549_s12 + $0x28] sm:$0xff]   ;;  %s2362_s21 = smov [#allocation11]   ;;  %p2036_p6 = scmp.eq.s32.totalorder %s2424_s24, 1 }
  0xd3   : > { %1932 = vmatprep.subr.bf16.mxu0 %v2100_v17  ;;  %v2108_v42 = vld [vmem:[#allocation2] sm:$0xff]   ;;  %v2105_v50 = vld [vmem:[%s2549_s12 + $0x10] sm:$0xff]   ;;  %v2106_v51 = vld [vmem:[%s2549_s12 + $0x8] sm:$0xff]   ;;  %s1637_s26 = sshll.u32 %s2362_s21, 4  ;;  %s1638_s26 = int_to_ptr.vmem [resolvable:$true] %s1637_s26 }
  0xd4   : > { %1933 = vmatpush3.bf16.xpose.msra.mxu0 %v2100_v17  ;;  %1948 = vmatprep.mubr.bf16.mxu0 %v2108_v42  ;;  %v2103_v43 = vld [vmem:[%s2549_s12 + $0x20] sm:$0xff]   ;;  %v2104_v49 = vld [vmem:[%s2549_s12 + $0x18] sm:$0xff]   ;;  %v2110_v55 = vld [vmem:[#allocation2 + $0x10] sm:$0xff]   ;;  %s2264_s14 = scalar_lea.vmem %s1638_s26, 2048  ;;  %p2271_p4 = scmp.lt.s32.totalorder %s1638_s26, %s1638_s26 }
  0xd5   : > { %1934 = vmatprep.subr.bf16.mxu0 %v2101_v40  ;;  %v2107_v53 = vld [vmem:[%s2549_s12] sm:$0xff]   ;;  %v2111_v57 = vld [vmem:[#allocation2 + $0x18] sm:$0xff]   ;;  %v2119_v7 = vld [vmem:[%s2557_s9 + $0x20] sm:$0xff]   ;;  %p2265_p12 = scmp.ne.s32.totalorder %s1638_s26, %s2264_s14  ;;  %p2272_p3 = scmp.lt.s32.totalorder %s2264_s14, %s2264_s14 }
  0xd6   : > { %v2109_v54 = vld [vmem:[#allocation2 + $0x8] sm:$0xff]   ;;  %v2112_v58 = vld [vmem:[#allocation2 + $0x20] sm:$0xff]   ;;  %v2118_v6 = vld [vmem:[%s2557_s9 + $0x28] sm:$0xff]  }
  0xd7   : > { %v2113_v63 = vld [vmem:[#allocation2 + $0x28] sm:$0xff]   ;;  %v2114_v1 = vld [vmem:[#allocation2 + $0x30] sm:$0xff]   ;;  %v2117_v5 = vld [vmem:[%s2557_s9 + $0x30] sm:$0xff]   ;;  %p2266_p9 = pnand %p2265_p12, %p2036_p6  ;;  %p2273_p0 = por %p2272_p3, %p2271_p4 }
  0xd8   : > { %v2115_v3 = vld [vmem:[#allocation2 + $0x38] sm:$0xff]   ;;  %v2116_v4 = vld [vmem:[%s2557_s9 + $0x38] sm:$0xff]   ;;  %v2123_v45 = vld [vmem:[%s2557_s9] sm:$0xff]  }
  0xd9   : > { %1964 = vmatprep.subr.bf16.mxu1 %v2116_v4  ;;  %v2120_v9 = vld [vmem:[%s2557_s9 + $0x18] sm:$0xff]   ;;  %v2121_v44 = vld [vmem:[%s2557_s9 + $0x10] sm:$0xff]   ;;  %v2122_v10 = vld [vmem:[%s2557_s9 + $0x8] sm:$0xff]   ;;  %p2267_p13 = pneg %p2266_p9 }
  0xda   : > { %1965 = vmatpush3.bf16.msra.mxu1 %v2116_v4  ;;  %v2647_v12 = vld [vmem:[%s2555_s13] ss:$0 sm:$0xff] }
  0xdb   : > { %1966 = vmatprep.subr.bf16.mxu1 %v2117_v5  ;;  %p2274_p1 = pnand %p2273_p0, %p2267_p13 }
  0xdc   : > { %1935 = vmatpush3.bf16.xpose.msra.mxu0 %v2101_v40 }
  0xdd   : > { %1936 = vmatprep.subr.bf16.mxu0 %v2102_v41 }
  0xde   : > { %1967 = vmatpush3.bf16.msra.mxu1 %v2117_v5 }
  0xdf   : > { %1968 = vmatprep.subr.bf16.mxu1 %v2118_v6 }
  0xe2   : > { %1969 = vmatpush3.bf16.msra.mxu1 %v2118_v6 }
  0xe3   : > { %1970 = vmatprep.subr.bf16.mxu1 %v2119_v7 }
  0xe4   : > { %1937 = vmatpush3.bf16.xpose.msra.mxu0 %v2102_v41 }
  0xe5   : > { %1938 = vmatprep.subr.bf16.mxu0 %v2103_v43 }
  0xe6   : > { %1971 = vmatpush3.bf16.msra.mxu1 %v2119_v7 }
  0xe7   : > { %1972 = vmatprep.subr.bf16.mxu1 %v2120_v9 }
  0xea   : > { %1973 = vmatpush3.bf16.msra.mxu1 %v2120_v9 }
  0xeb   : > { %1974 = vmatprep.subr.bf16.mxu1 %v2121_v44 }
  0xec   : > { %1939 = vmatpush3.bf16.xpose.msra.mxu0 %v2103_v43 }
  0xed   : > { %1940 = vmatprep.subr.bf16.mxu0 %v2104_v49 }
  0xee   : > { %1975 = vmatpush3.bf16.msra.mxu1 %v2121_v44 }
  0xef   : > { %1976 = vmatprep.subr.bf16.mxu1 %v2122_v10 }
  0xf2   : > { %1977 = vmatpush3.bf16.msra.mxu1 %v2122_v10 }
  0xf3   : > { %1978 = vmatprep.subr.bf16.mxu1 %v2123_v45 }
  0xf4   : > { %1941 = vmatpush3.bf16.xpose.msra.mxu0 %v2104_v49 }
  0xf5   : > { %1942 = vmatprep.subr.bf16.mxu0 %v2105_v50 }
  0xf6   : > { %1979 = vmatpush3.bf16.msra.mxu1 %v2123_v45 }
  0xfc   : > { %1943 = vmatpush3.bf16.xpose.msra.mxu0 %v2105_v50 }
  0xfd   : > { %1944 = vmatprep.subr.bf16.mxu0 %v2106_v51 }
 0x104   : > { %1945 = vmatpush3.bf16.xpose.msra.mxu0 %v2106_v51 }
 0x105   : > { %1946 = vmatprep.subr.bf16.mxu0 %v2107_v53 }
 0x10c   : > { %1947 = vmatpush3.bf16.xpose.msra.mxu0 %v2107_v53 }
 0x113   : > { %1949 = vmatmul.mubr.bf16.vlgmr.msra.gmra.mxu0 %v2109_v54 }
 0x114   : > { %1952 = vmatprep.mubr.bf16.mxu0 %v2110_v55 }
 0x11b   : > { %1953 = vmatmul.mubr.bf16.gmra.mxu0 %v2111_v57 }
 0x11c   : > { %1956 = vmatprep.mubr.bf16.mxu0 %v2112_v58 }
 0x123   : > { %1957 = vmatmul.mubr.bf16.gmra.mxu0 %v2113_v63 }
 0x124   : > { %1960 = vmatprep.mubr.bf16.mxu0 %v2114_v1 }
 0x12b   : > { %1961 = vmatmul.mubr.bf16.gmra.mxu0 %v2115_v3 }
 0x1d3   : > { %v1950_v11 = vpop.f32.mrf.mxu0 }
 0x1d4   : > { %v2653_v48 = vadd.f32 %v1950_v11, %v2647_v12 }
 0x1d5   : > { %v993_v46 = vpop.f32.mrf.mxu0 }
 0x1d6   : > { %v2650_v14 = vadd.f32 %v2647_v12, %v993_v46  ;;  %v1058_v20 = vmax.f32 %v2653_v48, 0.0 }
 0x1d7   : > { %v1951_v47 = vpop.f32.mrf.mxu0 }
 0x1d8   : > { %v1056_v56 = vmax.f32 %v2650_v14, 0.0  ;;  %v1005_v62 = vadd.f32 %v1951_v47, %v2647_v12 }
 0x1d9   : > { %v996_v15 = vpop.f32.mrf.mxu0 }
 0x1da   : > { %v997_v16 = vadd.f32 %v2647_v12, %v996_v15  ;;  %v1059_v24 = vmax.f32 %v1005_v62, 0.0 }
 0x1db   : > { %v1954_v52 = vpop.f32.mrf.mxu0 }
 0x1dc   : > { %v1057_v18 = vmax.f32 %v997_v16, 0.0  ;;  %v2661_v27 = vadd.f32 %v1954_v52, %v2647_v12 }
 0x1dd   : > { %v1009_v19 = vpop.f32.mrf.mxu0 }
 0x1de   : > { %v1121_v21 = vadd.f32 %v1057_v18, %v1056_v56  ;;  %v1010_v22 = vadd.f32 %v2647_v12, %v1009_v19  ;;  %v1062_v32 = vmax.f32 %v2661_v27, 0.0 }
 0x1df   : > { %v1955_v23 = vpop.f32.mrf.mxu0 }
 0x1e0   : > { %v1122_v25 = vadd.f32 %v1121_v21, %v1058_v20  ;;  %v1060_v59 = vmax.f32 %v1010_v22, 0.0  ;;  %v1021_v28 = vadd.f32 %v1955_v23, %v2647_v12 }
 0x1e1   : > { %v1012_v26 = vpop.f32.mrf.mxu0 }
 0x1e2   : > { %v1123_v60 = vadd.f32 %v1122_v25, %v1059_v24  ;;  %v1013_v29 = vadd.f32 %v2647_v12, %v1012_v26  ;;  %v1063_v35 = vmax.f32 %v1021_v28, 0.0 }
 0x1e3   : > { %v1958_v30 = vpop.f32.mrf.mxu0 }
 0x1e4   : > { %v1124_v61 = vadd.f32 %v1123_v60, %v1060_v59  ;;  %v1061_v0 = vmax.f32 %v1013_v29, 0.0  ;;  %v2670_v38 = vadd.f32 %v1958_v30, %v2647_v12 }
 0x1e5   : > { %v1025_v31 = vpop.f32.mrf.mxu0 }
 0x1e6   : > { %v1125_v33 = vadd.f32 %v1124_v61, %v1061_v0  ;;  %v2667_v36 = vadd.f32 %v2647_v12, %v1025_v31  ;;  %v1066_v50 = vmax.f32 %v2670_v38, 0.0 }
 0x1e7   : > { %v1959_v34 = vpop.f32.mrf.mxu0 }
 0x1e8   : > { %v1126_v2 = vadd.f32 %v1125_v33, %v1062_v32  ;;  %v1064_v40 = vmax.f32 %v2667_v36, 0.0  ;;  %v2677_v41 = vadd.f32 %v1959_v34, %v2647_v12 }
 0x1e9   : > { %v1028_v8 = vpop.f32.mrf.mxu0 }
 0x1ea   : > { %v1127_v37 = vadd.f32 %v1126_v2, %v1063_v35  ;;  %v2673_v39 = vadd.f32 %v2647_v12, %v1028_v8  ;;  %v1067_v57 = vmax.f32 %v2677_v41, 0.0 }
 0x1eb   : > { %v1962_v13 = vpop.f32.mrf.mxu0 }
 0x1ec   : > { %v1136_v17 = vrot.slane %v1127_v37, 4  ;;  %v1065_v42 = vmax.f32 %v2673_v39, 0.0  ;;  %v1050_v7 = vadd.f32 %v1962_v13, %v2647_v12 }
 0x1ed   : > { %v1041_v43 = vpop.f32.mrf.mxu0 }
 0x1ee   : > { %v1137_v49 = vadd.f32 %v1136_v17, %v1127_v37  ;;  %v1167_v51 = vadd.f32 %v1065_v42, %v1064_v40  ;;  %v2682_v53 = vadd.f32 %v2647_v12, %v1041_v43  ;;  %v1070_v46 = vmax.f32 %v1050_v7, 0.0 }
 0x1ef   : > { %v1963_v54 = vpop.f32.mrf.mxu0 }
 0x1f0   : > { %v1138_v55 = vrot.slane %v1137_v49, 2  ;;  %v1168_v58 = vadd.f32 %v1167_v51, %v1066_v50  ;;  %v1068_v3 = vmax.f32 %v2682_v53, 0.0  ;;  %v1053_v47 = vadd.f32 %v1963_v54, %v2647_v12 }
 0x1f1   : > { %v1044_v63 = vpop.f32.mrf.mxu0 }
 0x1f2   : > { %v1139_v1 = vadd.f32 %v1138_v55, %v1137_v49  ;;  %v1169_v4 = vadd.f32 %v1168_v58, %v1067_v57  ;;  %v1045_v5 = vadd.f32 %v2647_v12, %v1044_v63  ;;  %v1071_v21 = vmax.f32 %v1053_v47, 0.0 }
 0x1f4   : > { %v1140_v6 = vrot.slane %v1139_v1, 1  ;;  %v1170_v9 = vadd.f32 %v1169_v4, %v1068_v3  ;;  %v1069_v44 = vmax.f32 %v1045_v5, 0.0 }
 0x1f6   : > { %v1141_v10 = vadd.f32 %v1140_v6, %v1139_v1  ;;  %v1171_v45 = vadd.f32 %v1170_v9, %v1069_v44 }
 0x1f8   : > { %v1142_v11 = vmul.f32 0.015625, %v1141_v10  ;;  %v1172_v16 = vadd.f32 %v1171_v45, %v1070_v46 }
 0x1fa   : > { %v2689_v14 = vsub.f32 %v1056_v56, %v1142_v11  ;;  %v2691_v15 = vsub.f32 %v1057_v18, %v1142_v11  ;;  %v2693_v48 = vsub.f32 %v1058_v20, %v1142_v11  ;;  %v2695_v52 = vsub.f32 %v1059_v24, %v1142_v11 }
 0x1fb   : > { %v2701_v22 = vsub.f32 %v1060_v59, %v1142_v11  ;;  %v1173_v18 = vadd.f32 %v1172_v16, %v1071_v21  ;;  %v1202_v23 = vsub.f32 %v1061_v0, %v1142_v11  ;;  %v2707_v26 = vsub.f32 %v1062_v32, %v1142_v11 }
 0x1fc   : > { %v1213_v62 = vmul.f32 %v2689_v14, %v2689_v14  ;;  %v1214_v19 = vmul.f32 %v2691_v15, %v2691_v15  ;;  %v1215_v12 = vmul.f32 %v2693_v48, %v2693_v48  ;;  %v1216_v20 = vmul.f32 %v2695_v52, %v2695_v52 }
 0x1fd   : > { %v1174_v25 = vrot.slane %v1173_v18, 4  ;;  %v1217_v27 = vmul.f32 %v2701_v22, %v2701_v22  ;;  %v2711_v59 = vsub.f32 %v1063_v35, %v1142_v11  ;;  %v1218_v30 = vmul.f32 %v1202_v23, %v1202_v23 }
 0x1fe   : > { %v1245_v56 = vadd.f32 %v1214_v19, %v1213_v62  ;;  %v1219_v0 = vmul.f32 %v2707_v26, %v2707_v26 }
 0x1ff   : > { %v1175_v29 = vadd.f32 %v1174_v25, %v1173_v18  ;;  %v1220_v34 = vmul.f32 %v2711_v59, %v2711_v59  ;;  %v1821_v18 = vld [vmem:[%s2555_s13 + $0x1] ss:$0 sm:$0xff] }
 0x200   : > { %v1246_v24 = vadd.f32 %v1245_v56, %v1215_v12 }
 0x201   : > { %v1176_v28 = vrot.slane %v1175_v29, 2 }
 0x202   : > { %v1247_v60 = vadd.f32 %v1246_v24, %v1216_v20 }
 0x203   : > { %v1177_v33 = vadd.f32 %v1176_v28, %v1175_v29 }
 0x204   : > { %v1248_v61 = vadd.f32 %v1247_v60, %v1217_v27  ;;  %v2753_v60 = vld [vmem:[%s2555_s13 + $0x2] ss:$0 sm:$0xff] }
 0x205   : > { %v1178_v2 = vrot.slane %v1177_v33, 1 }
 0x206   : > { %v1249_v31 = vadd.f32 %v1248_v61, %v1218_v30 }
 0x207   : > { %v1179_v8 = vadd.f32 %v1178_v2, %v1177_v33 }
 0x208   : > { %v1250_v32 = vadd.f32 %v1249_v31, %v1219_v0 }
 0x209   : > { %v1180_v38 = vmul.f32 0.015625, %v1179_v8 }
 0x20a   : > { %v1251_v36 = vadd.f32 %v1250_v32, %v1220_v34 }
 0x20b   : > { %v2717_v35 = vsub.f32 %v1064_v40, %v1180_v38  ;;  %v2719_v13 = vsub.f32 %v1065_v42, %v1180_v38  ;;  %v2721_v17 = vsub.f32 %v1066_v50, %v1180_v38  ;;  %v2723_v43 = vsub.f32 %v1067_v57, %v1180_v38 }
 0x20c   : > { %v1260_v37 = vrot.slane %v1251_v36, 4  ;;  %v2729_v54 = vsub.f32 %v1068_v3, %v1180_v38  ;;  %v2733_v58 = vsub.f32 %v1069_v44, %v1180_v38  ;;  %v2737_v1 = vsub.f32 %v1070_v46, %v1180_v38 }
 0x20d   : > { %v1221_v49 = vmul.f32 %v2717_v35, %v2717_v35  ;;  %v1222_v51 = vmul.f32 %v2719_v13, %v2719_v13  ;;  %v1223_v40 = vmul.f32 %v2721_v17, %v2721_v17  ;;  %v1224_v50 = vmul.f32 %v2723_v43, %v2723_v43 }
 0x20e   : > { %v1261_v39 = vadd.f32 %v1260_v37, %v1251_v36  ;;  %v1225_v4 = vmul.f32 %v2729_v54, %v2729_v54  ;;  %v2741_v6 = vsub.f32 %v1071_v21, %v1180_v38  ;;  %v1226_v7 = vmul.f32 %v2733_v58, %v2733_v58 }
 0x20f   : > { %v1291_v55 = vadd.f32 %v1222_v51, %v1221_v49  ;;  %v1227_v10 = vmul.f32 %v2737_v1, %v2737_v1 }
 0x210   : > { %v1262_v41 = vrot.slane %v1261_v39, 2  ;;  %v1228_v11 = vmul.f32 %v2741_v6, %v2741_v6 }
 0x211   : > { %v1292_v57 = vadd.f32 %v1291_v55, %v1223_v40 }
 0x212   : > { %v1263_v53 = vadd.f32 %v1262_v41, %v1261_v39 }
 0x213   : > { %v1293_v5 = vadd.f32 %v1292_v57, %v1224_v50 }
 0x214   : > { %v1264_v42 = vrot.slane %v1263_v53, 1 }
 0x215   : > { %v1294_v9 = vadd.f32 %v1293_v5, %v1225_v4 }
 0x216   : > { %v1265_v63 = vadd.f32 %v1264_v42, %v1263_v53 }
 0x217   : > { %v1295_v45 = vadd.f32 %v1294_v9, %v1226_v7 }
 0x218   : > { %v1266_v3 = vmul.f32 0.015625, %v1265_v63 }
 0x219   : > { %v1296_v46 = vadd.f32 %v1295_v45, %v1227_v10 }
 0x21a   : > { %v1321_v44 = vadd.f32 1e-05, %v1266_v3 }
 0x21b   : > { %v1297_v47 = vadd.f32 %v1296_v46, %v1228_v11 }
 0x21c   : > { %2124 = vrsqrt.f32 %v1321_v44 }
 0x21d   : > { %v1298_v16 = vrot.slane %v1297_v47, 4 }
 0x21f   : > { %v1299_v62 = vadd.f32 %v1298_v16, %v1297_v47 }
 0x221   : > { %v1300_v19 = vrot.slane %v1299_v62, 2 }
 0x223   : > { %v1301_v21 = vadd.f32 %v1300_v19, %v1299_v62 }
 0x225   : > { %v1302_v12 = vrot.slane %v1301_v21, 1 }
 0x227   : > { %v1303_v24 = vadd.f32 %v1302_v12, %v1301_v21  ;;  %v1413_v12 = vld [vmem:[#allocation11 + $0x10] sm:$0xff] }
 0x229   : > { %v2125_v56 = vpop.eup %2124  ;;  %v1304_v31 = vmul.f32 0.015625, %v1303_v24 }
 0x22a   : > { %v1358_v20 = vmul.f32 %v2125_v56, %v1202_v23  ;;  %v1353_v25 = vmul.f32 %v2125_v56, %v2689_v14  ;;  %v1354_v27 = vmul.f32 %v2125_v56, %v2691_v15  ;;  %v1355_v29 = vmul.f32 %v2125_v56, %v2693_v48 }
 0x22b   : > { %v1356_v30 = vmul.f32 %v2125_v56, %v2695_v52  ;;  %v1357_v61 = vmul.f32 %v2125_v56, %v2701_v22  ;;  %v1359_v28 = vmul.f32 %v2125_v56, %v2707_v26  ;;  %v1360_v14 = vmul.f32 %v2125_v56, %v2711_v59 }
 0x22c   : > { %v1379_v0 = vmul.f32 %v1821_v18, %v1358_v20  ;;  %v1374_v33 = vmul.f32 %v1821_v18, %v1353_v25  ;;  %v1375_v34 = vmul.f32 %v1821_v18, %v1354_v27  ;;  %v1376_v23 = vmul.f32 %v1821_v18, %v1355_v29  ;;  %v1411_v20 = vld [vmem:[#allocation11] sm:$0xff]  ;;  %v1414_v27 = vld [vmem:[#allocation11 + $0x18] sm:$0xff] }
 0x22d   : > { %v1377_v32 = vmul.f32 %v1821_v18, %v1356_v30  ;;  %v1378_v2 = vmul.f32 %v1821_v18, %v1357_v61  ;;  %v1329_v15 = vadd.f32 1e-05, %v1304_v31  ;;  %v1380_v39 = vmul.f32 %v1821_v18, %v1359_v28 }
 0x22e   : > { %v1395_v36 = vadd.f32 %v2753_v60, %v1374_v33  ;;  %v1396_v48 = vadd.f32 %v2753_v60, %v1375_v34  ;;  %v1400_v52 = vadd.f32 %v2753_v60, %v1379_v0  ;;  %v1397_v22 = vadd.f32 %v2753_v60, %v1376_v23  ;;  %v1417_v0 = vld [vmem:[#allocation11 + $0x30] sm:$0xff] }
 0x22f   : > { %v1398_v26 = vadd.f32 %v2753_v60, %v1377_v32  ;;  %v1399_v8 = vadd.f32 %v2753_v60, %v1378_v2  ;;  %2126 = vrsqrt.f32 %v1329_v15  ;;  %v1381_v41 = vmul.f32 %v1821_v18, %v1360_v14  ;;  %v1418_v32 = vld [vmem:[#allocation11 + $0x38] sm:$0xff]  ;;  %v1416_v15 = vld [vmem:[#allocation11 + $0x28] sm:$0xff] }
 0x230   : > { %v1427_v37 = vpack.c.bf16 %v1396_v48, %v1395_v36  ;;  %v1401_v49 = vadd.f32 %v2753_v60, %v1380_v39  ;;  %v1422_v39 = vld [vmem:[#allocation11 + $0x58] sm:$0xff] }
 0x231   : > { %v1428_v38 = vpack.c.bf16 %v1398_v26, %v1397_v22  ;;  %v1429_v59 = vpack.c.bf16 %v1400_v52, %v1399_v8  ;;  %v1402_v51 = vadd.f32 %v2753_v60, %v1381_v41  ;;  %v1421_v22 = vld [vmem:[#allocation11 + $0x50] sm:$0xff]  ;;  %v1419_v8 = vld [vmem:[#allocation11 + $0x40] sm:$0xff] }
 0x232   : > { %1980 = vmatprep.mubr.bf16.mxu1 %v1427_v37 }
 0x233   : > { %1981 = vmatmul.mubr.bf16.vlgmr.msra.gmra.mxu1 %v1428_v38  ;;  %v1430_v53 = vpack.c.bf16 %v1402_v51, %v1401_v49  ;;  %v1420_v49 = vld [vmem:[#allocation11 + $0x48] sm:$0xff] }
 0x234   : > { %1984 = vmatprep.mubr.bf16.mxu1 %v1429_v59 }
 0x23b   : > { %1985 = vmatmul.mubr.bf16.gmra.mxu1 %v1430_v53 }
 0x23c   : > { %v2127_v40 = vpop.eup %2126 }
 0x23d   : > { %v1366_v55 = vmul.f32 %v2127_v40, %v2733_v58  ;;  %v1361_v42 = vmul.f32 %v2127_v40, %v2717_v35  ;;  %v1362_v50 = vmul.f32 %v2127_v40, %v2719_v13  ;;  %v1363_v57 = vmul.f32 %v2127_v40, %v2721_v17 }
 0x23e   : > { %v1364_v63 = vmul.f32 %v2127_v40, %v2723_v43  ;;  %v1365_v4 = vmul.f32 %v2127_v40, %v2729_v54  ;;  %v1367_v45 = vmul.f32 %v2127_v40, %v2737_v1  ;;  %v1368_v58 = vmul.f32 %v2127_v40, %v2741_v6  ;;  %v1425_v40 = vld [vmem:[#allocation11 + $0x70] sm:$0xff] }
 0x23f   : > { %v1387_v5 = vmul.f32 %v1821_v18, %v1366_v55  ;;  %v1382_v3 = vmul.f32 %v1821_v18, %v1361_v42  ;;  %v1383_v7 = vmul.f32 %v1821_v18, %v1362_v50  ;;  %v1384_v9 = vmul.f32 %v1821_v18, %v1363_v57  ;;  %v1423_v50 = vld [vmem:[#allocation11 + $0x60] sm:$0xff] }
 0x240   : > { %v1385_v44 = vmul.f32 %v1821_v18, %v1364_v63  ;;  %v1386_v10 = vmul.f32 %v1821_v18, %v1365_v4  ;;  %v1388_v16 = vmul.f32 %v1821_v18, %v1367_v45  ;;  %v1389_v62 = vmul.f32 %v1821_v18, %v1368_v58  ;;  %v1412_v18 = vld [vmem:[#allocation11 + $0x8] sm:$0xff]  ;;  %v1426_v4 = vld [vmem:[#allocation11 + $0x78] sm:$0xff] }
 0x241   : > { %v1403_v35 = vadd.f32 %v2753_v60, %v1382_v3  ;;  %v1404_v13 = vadd.f32 %v2753_v60, %v1383_v7  ;;  %v1405_v17 = vadd.f32 %v2753_v60, %v1384_v9  ;;  %v1408_v43 = vadd.f32 %v2753_v60, %v1387_v5  ;;  %v1424_v7 = vld [vmem:[#allocation11 + $0x68] sm:$0xff] }
 0x242   : > { %v1406_v54 = vadd.f32 %v2753_v60, %v1385_v44  ;;  %v1407_v11 = vadd.f32 %v2753_v60, %v1386_v10  ;;  %v1409_v6 = vadd.f32 %v2753_v60, %v1388_v16  ;;  %v1410_v19 = vadd.f32 %v2753_v60, %v1389_v62  ;;  %v1415_v60 = vld [vmem:[#allocation11 + $0x20] sm:$0xff] }
 0x243   : > { %v1431_v46 = vpack.c.bf16 %v1404_v13, %v1403_v35 }
 0x244   : > { %v1432_v47 = vpack.c.bf16 %v1406_v54, %v1405_v17  ;;  %v1433_v1 = vpack.c.bf16 %v1408_v43, %v1407_v11  ;;  %v1434_v21 = vpack.c.bf16 %v1410_v19, %v1409_v6 }
 0x245   : > { %1988 = vmatprep.mubr.bf16.mxu1 %v1431_v46 }
 0x246   : > { %1989 = vmatmul.mubr.bf16.gmra.mxu1 %v1432_v47 }
 0x247   : > { %1992 = vmatprep.mubr.bf16.mxu1 %v1433_v1 }
 0x24e   : > { %1993 = vmatmul.mubr.bf16.gmra.mxu1 %v1434_v21 }
 0x2f3   : > { %v1982_v56 = vpop.f32.mrf.mxu1 }
 0x2f4   : > { %v1598_v24 = vadd.f32 %v1982_v56, %v1413_v12 }
 0x2f5   : > { %v1533_v25 = vpop.f32.mrf.mxu1 }
 0x2f6   : > { %1614 = vst [vmem:[#allocation11 + $0x10] sm:$0xff] %v1598_v24  ;;  %v1596_v29 = vadd.f32 %v1533_v25, %v1411_v20 }
 0x2f7   : > { %v1983_v30 = vpop.f32.mrf.mxu1 }
 0x2f8   : > { %1612 = vst [vmem:[#allocation11] sm:$0xff] %v1596_v29  ;;  %v1599_v61 = vadd.f32 %v1983_v30, %v1414_v27 }
 0x2f9   : > { %v1536_v28 = vpop.f32.mrf.mxu1 }
 0x2fa   : > { %1615 = vst [vmem:[#allocation11 + $0x18] sm:$0xff] %v1599_v61  ;;  %v1597_v31 = vadd.f32 %v1536_v28, %v1412_v18 }
 0x2fb   : > { %v1986_v33 = vpop.f32.mrf.mxu1 }
 0x2fc   : > { %1613 = vst [vmem:[#allocation11 + $0x8] sm:$0xff] %v1597_v31  ;;  %v1602_v34 = vadd.f32 %v1986_v33, %v1417_v0 }
 0x2fd   : > { %v1549_v23 = vpop.f32.mrf.mxu1 }
 0x2fe   : > { %1618 = vst [vmem:[#allocation11 + $0x30] sm:$0xff] %v1602_v34  ;;  %v1600_v2 = vadd.f32 %v1549_v23, %v1415_v60 }
 0x2ff   : > { %v1987_v14 = vpop.f32.mrf.mxu1 }
 0x300   : > { %1616 = vst [vmem:[#allocation11 + $0x20] sm:$0xff] %v1600_v2  ;;  %v1603_v36 = vadd.f32 %v1987_v14, %v1418_v32 }
 0x301   : > { %v1552_v48 = vpop.f32.mrf.mxu1 }
 0x302   : > { %1619 = vst [vmem:[#allocation11 + $0x38] sm:$0xff] %v1603_v36  ;;  %v1601_v52 = vadd.f32 %v1552_v48, %v1416_v15 }
 0x304   : > { %1617 = vst [vmem:[#allocation11 + $0x28] sm:$0xff] %v1601_v52 }
 0x306   : > { %v1990_v26 = vpop.f32.mrf.mxu1 }
 0x307   : > { %v1606_v37 = vadd.f32 %v1990_v26, %v1421_v22 }
 0x308   : > { %v1565_v38 = vpop.f32.mrf.mxu1 }
 0x309   : > { %1622 = vst [vmem:[#allocation11 + $0x50] sm:$0xff] %v1606_v37  ;;  %v1604_v41 = vadd.f32 %v1565_v38, %v1419_v8 }
 0x30a   : > { %v1991_v59 = vpop.f32.mrf.mxu1 }
 0x30b   : > { %1620 = vst [vmem:[#allocation11 + $0x40] sm:$0xff] %v1604_v41  ;;  %v1607_v51 = vadd.f32 %v1991_v59, %v1422_v39 }
 0x30c   : > { %v1568_v53 = vpop.f32.mrf.mxu1 }
 0x30d   : > { %1623 = vst [vmem:[#allocation11 + $0x58] sm:$0xff] %v1607_v51  ;;  %v1605_v55 = vadd.f32 %v1568_v53, %v1420_v49 }
 0x30e   : > { %v1994_v42 = vpop.f32.mrf.mxu1 }
 0x30f   : > { %1621 = vst [vmem:[#allocation11 + $0x48] sm:$0xff] %v1605_v55  ;;  %v1610_v57 = vadd.f32 %v1994_v42, %v1425_v40 }
 0x310   : > { %v1581_v63 = vpop.f32.mrf.mxu1 }
 0x311   : > { %1626 = vst [vmem:[#allocation11 + $0x70] sm:$0xff] %v1610_v57  ;;  %v1608_v5 = vadd.f32 %v1581_v63, %v1423_v50 }
 0x312   : > { %v1995_v3 = vpop.f32.mrf.mxu1 }
 0x313   : > { %1624 = vst [vmem:[#allocation11 + $0x60] sm:$0xff] %v1608_v5  ;;  %v1611_v9 = vadd.f32 %v1995_v3, %v1426_v4 }
 0x314   : > { %v1584_v44 = vpop.f32.mrf.mxu1 }
 0x315   : > { %1627 = vst [vmem:[#allocation11 + $0x78] sm:$0xff] %v1611_v9  ;;  %v1609_v10 = vadd.f32 %v1584_v44, %v1424_v7 }
 0x317   : > { %1625 = vst [vmem:[#allocation11 + $0x68] sm:$0xff] %v1609_v10 }
 0x318   : > { %2277 = shalt.err (!%p2274_p1)
}
 0x319   : > { %s2363_s29 = smov 128   ;;  %s2364_s2 = smov 8  }
 0x31a   : > { %2011 = dma.vmem_to_hbm [thread:$0]  (%p2036_p6), %s1638_s26, 2048, %s2819_s5, [#allocation5], %s2363_s29, %s2363_s29, %s2364_s2  }
 0x31b   : > { %2325 = dma.done.wait (%p2036_p6), [#allocation5], 2048  }
 0x31c   : > { %2327 = vsyncadd (%p2036_p6), [#allocation5], 4294965248 }
 0x31d PF: > { %s18_s23 = sadd.s32 1, %s2350_s23   ;;  %s2838_s10 = sld [smem:[#allocation17_spill]] }
 0x31e   : > { %p15_p2 = scmp.ge.s32.totalorder %s18_s23, 4   ;;  %s2839_s16 = sld [smem:[#allocation16_spill]] }
 0x31f   : > { %s2840_s18 = smov %s2334_s19  ;;  %s2841_s19 = smov %s2338_s20 }
 0x320   : > { %s2843_s21 = smov %s2346_s22  ;;  %17 = sbr.rel (!%p15_p2) target bundleno = 8 (0x8), region = 111 }
 0x323   : > { %s2842_s20 = smov %s2838_s10 }
 0x324   : > { %s2844_s22 = smov %s2839_s16 }
 0x325   :  { %1653 = vsyncpa [#allocation4], 1 }
 0x326   :  { %1655 = vsyncpa [#allocation4 + $0x1], 1 }
 0x327   :  { %1656 = vsyncpa [#allocation7], 1 }
 0x328   :  { %1657 = vsyncpa [#allocation5], 1 }
 0x329   :  { %1659 = vsyncpa [#allocation5 + $0x1], 1 }

</bundles_post_ra>
